<compile_context>
chip_gen: v5e
topology: v5e:2x2
jax: 0.10.0
libtpu: 0.0.40
codegen_flags: <defaults>
</compile_context>

<pallas_src>
import math
from functools import partial

import jax
import jax.numpy as jnp
from jax.experimental import pallas as pl
from jax.experimental.pallas import tpu as pltpu


def _round_up(x, m):
    return ((x + m - 1) // m) * m


# ----------------------------------------------------------------------------
# Fused kernel: per (batch-tile i, o-block j)
#   h              = GELU(x @ W1 + b1)            (once per i, cached in scratch)
#   logits         = h @ W2[:, j-block] + b2[j]   (TB, o_blk*M)   one MXU matmul
#   for oo in block: coef = softmax(logits[:, oo*M:(oo+1)*M])
#                    out_oo = coef @ attributes   (TB, V)
#   store concat(out_oo) -> (TB, o_blk*V) lane-dense block
# ----------------------------------------------------------------------------
def _promptg_kernel(x_ref, w1_ref, b1_ref, w2_ref, b2_ref, attr_ref,
                    out_ref, h_ref, *, o_blk, embed_num, n_o_blocks, use_bf16):
    j = pl.program_id(1)

    # Hidden activations are o-invariant: compute once per batch tile.
    @pl.when(j == 0)
    def _():
        x = x_ref[...]
        w1 = w1_ref[...]
        if use_bf16:
            x = x.astype(jnp.bfloat16)
            w1 = w1.astype(jnp.bfloat16)
        h = jnp.dot(x, w1, preferred_element_type=jnp.float32) + b1_ref[...]
        # exact (erf-based) GELU == torch.nn.GELU() default
        h_ref[...] = 0.5 * h * (1.0 + jax.lax.erf(h * (1.0 / math.sqrt(2.0))))

    # Logits for this block of prompt positions: one lane-dense MXU matmul.
    h = h_ref[...]
    w2 = w2_ref[...]                                        # (H, o_blk*M)
    if use_bf16:
        h = h.astype(jnp.bfloat16)
        w2 = w2.astype(jnp.bfloat16)
    logits = jnp.dot(h, w2, preferred_element_type=jnp.float32)   # (TB, o_blk*M)

    cols = o_blk * embed_num
    if n_o_blocks == 1:
        b2 = b2_ref[...]                                    # whole (1, O*M)
    else:
        off = pl.multiple_of(j * cols, cols)
        b2 = b2_ref[:, pl.ds(off, cols)]
    logits = logits + b2

    attrs = attr_ref[...]                                   # (M, V), f32

    # Per-position softmax + attribute mix, unrolled over the o-block; single
    # lane-dense store of the concatenated result.
    pieces = []
    for oo in range(o_blk):
        lg = logits[:, oo * embed_num:(oo + 1) * embed_num]          # (TB, M)
        mx = jnp.max(lg, axis=-1, keepdims=True)
        e = jnp.exp(lg - mx)
        coef = e / jnp.sum(e, axis=-1, keepdims=True)                # exact softmax
        pieces.append(jnp.dot(coef, attrs, preferred_element_type=jnp.float32))
    out_ref[...] = jnp.concatenate(pieces, axis=-1).astype(out_ref.dtype)


@partial(jax.jit, static_argnames=("prompt_len", "prompt_layers", "batch_tile",
                                   "o_block", "use_bf16"))
def promptg_forward(x, params, *, prompt_len, prompt_layers,
                    batch_tile=256, o_block=None, use_bf16=True):
    """Pallas implementation of PromptG.forward."""
    w1, b1, w2, b2, attributes = (
        params["w1"], params["b1"], params["w2"], params["b2"], params["attributes"]
    )
    B, Din = x.shape
    H = w1.shape[1]
    M, V = attributes.shape
    O = prompt_len * prompt_layers
    assert w2.shape == (H, O * M) and b2.shape == (1, O * M)

    f32 = 4

    # ---- batch tiling: pad to a sublane multiple; >=2 tiles when possible (v7x
    #      megacore) since the o-axis is "arbitrary" (carries the h scratch).
    B8 = _round_up(B, 8)
    TB = min(batch_tile, B8)
    if B8 >= 16:
        TB = min(TB, _round_up(pl.cdiv(B8, 2), 8))
    B_pad = _round_up(B8, TB)
    n_btiles = B_pad // TB
    if B_pad != B:
        x = jnp.pad(x, ((0, B_pad - B), (0, 0)))

    # ---- o-axis blocking over W2's native (H, O*M) column layout (no transpose)
    if o_block is None:
        w2_budget = 40 << 20                       # double-buffered W2 block budget
        o_blk = O
        if 2 * H * O * M * f32 > w2_budget:
            cands = [d for d in range(1, O) if O % d == 0
                     and (d * M) % 128 == 0 and (d * V) % 128 == 0
                     and 2 * H * d * M * f32 <= w2_budget and d <= 64]
            if cands:
                o_blk = max(cands)
    else:
        o_blk = o_block
    assert O % o_blk == 0
    n_oblocks = O // o_blk

    # ---- VMEM budget: actual resident set (double-buffered blocks) + headroom
    resident = (2 * TB * Din + 2 * Din * H + 2 * H + 2 * H * o_blk * M
                + 2 * O * M + 2 * M * V + 2 * TB * o_blk * V + TB * H) * f32
    vmem_limit = int(min(100 << 20, max(16 << 20, resident + (8 << 20))))

    cost = pl.CostEstimate(
        flops=2 * B_pad * (Din * H + H * O * M + O * M * V),
        transcendentals=B_pad * (H + O * M),
        bytes_accessed=(B_pad * Din + Din * H + H + H * O * M + O * M
                        + M * V + B_pad * O * V) * f32,
    )

    kernel = partial(_promptg_kernel, o_blk=o_blk, embed_num=M,
                     n_o_blocks=n_oblocks, use_bf16=use_bf16)

    prompts_flat = pl.pallas_call(
        kernel,
        out_shape=jax.ShapeDtypeStruct((B_pad, O * V), jnp.float32),
        grid_spec=pltpu.PrefetchScalarGridSpec(
            num_scalar_prefetch=0,
            grid=(n_btiles, n_oblocks),
            in_specs=[
                pl.BlockSpec((TB, Din), lambda i, j: (i, 0)),          # x (batch tile)
                pl.BlockSpec((Din, H), lambda i, j: (0, 0)),           # W1 resident
                pl.BlockSpec((1, H), lambda i, j: (0, 0)),             # b1 resident
                pl.BlockSpec((H, o_blk * M), lambda i, j: (0, j)),     # W2 column block
                pl.BlockSpec((1, O * M), lambda i, j: (0, 0)),         # b2 resident
                pl.BlockSpec((M, V), lambda i, j: (0, 0)),             # attributes resident
            ],
            out_specs=pl.BlockSpec((TB, o_blk * V), lambda i, j: (i, j)),
            scratch_shapes=[pltpu.VMEM((TB, H), jnp.float32)],         # cached GELU hidden
        ),
        compiler_params=pltpu.CompilerParams(
            dimension_semantics=("parallel", "arbitrary"),
            vmem_limit_bytes=vmem_limit,
        ),
        cost_estimate=cost,
    )(x, w1, b1, w2, b2, attributes)

    prompts = prompts_flat[:B].reshape(B, O, V)
    if prompt_layers > 1:
        # torch: prompts.view(-1, prompt_layers, prompt_len, embed_dim)
        return prompts.reshape(B, prompt_layers, prompt_len, V)
    return prompts


# ----------------------------------------------------------------------------
# Deterministic parameter construction (matches shapes in PromptG.__init__).
# Linear weights stored transposed vs torch: (in_features, out_features).
# ----------------------------------------------------------------------------
def init_params(key, embed_num, embed_dim, proj_input_dim, proj_hidd_dim,
                prompt_len, prompt_layers):
    k_attr, k_w1, k_b1, k_w2, k_b2 = jax.random.split(key, 5)
    out2 = prompt_len * prompt_layers * embed_num
    return {
        # rawEmbed ~ N(0, 0.02)
        "attributes": 0.02 * jax.random.normal(k_attr, (embed_num, embed_dim), jnp.float32),
        "w1": 0.05 * jax.random.normal(k_w1, (proj_input_dim, proj_hidd_dim), jnp.float32),
        "b1": 0.05 * jax.random.normal(k_b1, (1, proj_hidd_dim), jnp.float32),
        "w2": 0.05 * jax.random.normal(k_w2, (proj_hidd_dim, out2), jnp.float32),
        "b2": 0.05 * jax.random.normal(k_b2, (1, out2), jnp.float32),
    }


# Pure-JAX reference (no torch) used only to sanity-check the kernel.
def promptg_reference(x, params, *, prompt_len, prompt_layers):
    h = jax.nn.gelu(x @ params["w1"] + params["b1"], approximate=False)
    logits = h @ params["w2"] + params["b2"]
    B = x.shape[0]
    embed_num, embed_dim = params["attributes"].shape
    O = prompt_len * prompt_layers
    coef = jax.nn.softmax(logits.reshape(B, O, embed_num), axis=-1)
    prompts = jnp.einsum("bom,mv->bov", coef, params["attributes"])
    if prompt_layers > 1:
        return prompts.reshape(B, prompt_layers, prompt_len, embed_dim)
    return prompts


if __name__ == "__main__":
    # small, forward-consistent shapes
    embed_num = 8
    embed_dim = 32
    proj_input_dim = 16
    proj_hidd_dim = 32
    prompt_len = 4
    prompt_layers = 3
    batch = 2

    key = jax.random.PRNGKey(0)
    k_x, k_p = jax.random.split(key)
    x = jax.random.normal(k_x, (batch, proj_input_dim), jnp.float32)
    params = init_params(k_p, embed_num, embed_dim, proj_input_dim,
                         proj_hidd_dim, prompt_len, prompt_layers)

    out = promptg_forward(x, params, prompt_len=prompt_len,
                          prompt_layers=prompt_layers)
    out = jax.block_until_ready(out)

    assert out.shape == (batch, prompt_layers, prompt_len, embed_dim), out.shape

    ref = promptg_reference(x, params, prompt_len=prompt_len,
                            prompt_layers=prompt_layers)
    # tolerance accounts for bf16 MXU operands (f32 accumulation); softmax is exact
    assert jnp.allclose(out, ref, atol=2e-3, rtol=2e-2), \
        float(jnp.max(jnp.abs(out - ref)))

    print("KERNEL_OK")
</pallas_src>

<mosaic_0001>
module attributes {stable_mosaic.version = 11 : i64} {
  func.func @_promptg_kernel(%arg0: i32, %arg1: i32, %arg2: memref<8x16xf32, #tpu.memory_space<vmem>>, %arg3: memref<16x32xf32, #tpu.memory_space<vmem>>, %arg4: memref<1x32xf32, #tpu.memory_space<vmem>>, %arg5: memref<32x96xf32, #tpu.memory_space<vmem>>, %arg6: memref<1x96xf32, #tpu.memory_space<vmem>>, %arg7: memref<8x32xf32, #tpu.memory_space<vmem>>, %arg8: memref<8x384xf32, #tpu.memory_space<vmem>>, %arg9: memref<8x32xf32, #tpu.memory_space<vmem>>) attributes {dimension_semantics = [#tpu.dimension_semantics<parallel>, #tpu.dimension_semantics<arbitrary>], iteration_bounds = array<i64: 1, 1>, scalar_prefetch = 0 : i64, scratch_operands = 1 : i64, tpu.core_type = #tpu.core_type<tc>, window_params = [{transform_indices = @transform_0, window_bounds = array<i64: 8, 16>}, {pipeline_mode = #tpu.pipeline_mode<synchronous>, transform_indices = @transform_1, window_bounds = array<i64: 16, 32>}, {pipeline_mode = #tpu.pipeline_mode<synchronous>, transform_indices = @transform_2, window_bounds = array<i64: 1, 32>}, {transform_indices = @transform_3, window_bounds = array<i64: 32, 96>}, {pipeline_mode = #tpu.pipeline_mode<synchronous>, transform_indices = @transform_4, window_bounds = array<i64: 1, 96>}, {pipeline_mode = #tpu.pipeline_mode<synchronous>, transform_indices = @transform_5, window_bounds = array<i64: 8, 32>}, {transform_indices = @transform_6, window_bounds = array<i64: 8, 384>}]} {
    %c0_i32 = arith.constant 0 : i32
    %0 = arith.cmpi eq, %arg1, %c0_i32 : i32
    %1 = arith.extui %0 : i1 to i32
    %c0_i32_0 = arith.constant 0 : i32
    %2 = arith.cmpi ne, %1, %c0_i32_0 : i32
    scf.if %2 {
      %c0_46 = arith.constant 0 : index
      %c0_47 = arith.constant 0 : index
      %146 = vector.load %arg2[%c0_46, %c0_47] : memref<8x16xf32, #tpu.memory_space<vmem>>, vector<8x16xf32>
      %c0_48 = arith.constant 0 : index
      %c0_49 = arith.constant 0 : index
      %147 = vector.load %arg3[%c0_48, %c0_49] : memref<16x32xf32, #tpu.memory_space<vmem>>, vector<16x32xf32>
      %148 = arith.truncf %146 : vector<8x16xf32> to vector<8x16xbf16>
      %149 = arith.truncf %147 : vector<16x32xf32> to vector<16x32xbf16>
      %cst_50 = arith.constant dense<0.000000e+00> : vector<8x32xf32>
      %150 = tpu.matmul %148, %149, %cst_50 {dimension_numbers = #tpu.dot_dimension_numbers<[1], [0], [0], [1], [0, 0, 1, 1], [], []>} : vector<8x16xbf16>, vector<16x32xbf16>, vector<8x32xf32> -> vector<8x32xf32>
      %c0_51 = arith.constant 0 : index
      %c0_52 = arith.constant 0 : index
      %151 = vector.load %arg4[%c0_51, %c0_52] : memref<1x32xf32, #tpu.memory_space<vmem>>, vector<1x32xf32>
      %152 = vector.broadcast %151 : vector<1x32xf32> to vector<8x32xf32>
      %153 = arith.addf %150, %152 : vector<8x32xf32>
      %cst_53 = arith.constant 5.000000e-01 : f32
      %154 = vector.broadcast %cst_53 : f32 to vector<8x32xf32>
      %155 = arith.mulf %154, %153 : vector<8x32xf32>
      %cst_54 = arith.constant 0.707106769 : f32
      %156 = vector.broadcast %cst_54 : f32 to vector<8x32xf32>
      %157 = arith.mulf %153, %156 : vector<8x32xf32>
      %158 = math.erf %157 : vector<8x32xf32>
      %cst_55 = arith.constant 1.000000e+00 : f32
      %159 = vector.broadcast %cst_55 : f32 to vector<8x32xf32>
      %160 = arith.addf %159, %158 : vector<8x32xf32>
      %161 = arith.mulf %155, %160 : vector<8x32xf32>
      %c0_56 = arith.constant 0 : index
      %c0_57 = arith.constant 0 : index
      %162 = vector.load %arg9[%c0_56, %c0_57] : memref<8x32xf32, #tpu.memory_space<vmem>>, vector<8x32xf32>
      tpu.vector_store %arg9[%c0_56, %c0_57], %161 {strides = array<i32>} : memref<8x32xf32, #tpu.memory_space<vmem>>, vector<8x32xf32>,
    } else {
    }
    %c0 = arith.constant 0 : index
    %c0_1 = arith.constant 0 : index
    %3 = vector.load %arg9[%c0, %c0_1] : memref<8x32xf32, #tpu.memory_space<vmem>>, vector<8x32xf32>
    %c0_2 = arith.constant 0 : index
    %c0_3 = arith.constant 0 : index
    %4 = vector.load %arg5[%c0_2, %c0_3] : memref<32x96xf32, #tpu.memory_space<vmem>>, vector<32x96xf32>
    %5 = arith.truncf %3 : vector<8x32xf32> to vector<8x32xbf16>
    %6 = arith.truncf %4 : vector<32x96xf32> to vector<32x96xbf16>
    %cst = arith.constant dense<0.000000e+00> : vector<8x96xf32>
    %7 = tpu.matmul %5, %6, %cst {dimension_numbers = #tpu.dot_dimension_numbers<[1], [0], [0], [1], [0, 0, 1, 1], [], []>} : vector<8x32xbf16>, vector<32x96xbf16>, vector<8x96xf32> -> vector<8x96xf32>
    %c0_4 = arith.constant 0 : index
    %c0_5 = arith.constant 0 : index
    %8 = vector.load %arg6[%c0_4, %c0_5] : memref<1x96xf32, #tpu.memory_space<vmem>>, vector<1x96xf32>
    %9 = vector.broadcast %8 : vector<1x96xf32> to vector<8x96xf32>
    %10 = arith.addf %7, %9 : vector<8x96xf32>
    %c0_6 = arith.constant 0 : index
    %c0_7 = arith.constant 0 : index
    %11 = vector.load %arg7[%c0_6, %c0_7] : memref<8x32xf32, #tpu.memory_space<vmem>>, vector<8x32xf32>
    %12 = vector.extract_strided_slice %10 {offsets = [0, 0], sizes = [8, 8], strides = [1, 1]} : vector<8x96xf32> to vector<8x8xf32>
    %cst_8 = arith.constant dense<0xFF800000> : vector<8xf32>
    %13 = vector.multi_reduction <maximumf>, %12, %cst_8 [1] : vector<8x8xf32> to vector<8xf32>
    %14 = vector.shape_cast %13 : vector<8xf32> to vector<8x1xf32>
    %15 = vector.broadcast %14 : vector<8x1xf32> to vector<8x8xf32>
    %16 = arith.subf %12, %15 : vector<8x8xf32>
    %17 = math.exp %16 : vector<8x8xf32>
    %cst_9 = arith.constant dense<0.000000e+00> : vector<8xf32>
    %18 = vector.multi_reduction <add>, %17, %cst_9 [1] : vector<8x8xf32> to vector<8xf32>
    %19 = vector.shape_cast %18 : vector<8xf32> to vector<8x1xf32>
    %20 = vector.broadcast %19 : vector<8x1xf32> to vector<8x8xf32>
    %21 = arith.divf %17, %20 : vector<8x8xf32>
    %cst_10 = arith.constant dense<0.000000e+00> : vector<8x32xf32>
    %22 = tpu.matmul %21, %11, %cst_10 {dimension_numbers = #tpu.dot_dimension_numbers<[1], [0], [0], [1], [0, 0, 1, 1], [], []>} : vector<8x8xf32>, vector<8x32xf32>, vector<8x32xf32> -> vector<8x32xf32>
    %23 = vector.extract_strided_slice %10 {offsets = [0, 8], sizes = [8, 8], strides = [1, 1]} : vector<8x96xf32> to vector<8x8xf32>
    %cst_11 = arith.constant dense<0xFF800000> : vector<8xf32>
    %24 = vector.multi_reduction <maximumf>, %23, %cst_11 [1] : vector<8x8xf32> to vector<8xf32>
    %25 = vector.shape_cast %24 : vector<8xf32> to vector<8x1xf32>
    %26 = vector.broadcast %25 : vector<8x1xf32> to vector<8x8xf32>
    %27 = arith.subf %23, %26 : vector<8x8xf32>
    %28 = math.exp %27 : vector<8x8xf32>
    %cst_12 = arith.constant dense<0.000000e+00> : vector<8xf32>
    %29 = vector.multi_reduction <add>, %28, %cst_12 [1] : vector<8x8xf32> to vector<8xf32>
    %30 = vector.shape_cast %29 : vector<8xf32> to vector<8x1xf32>
    %31 = vector.broadcast %30 : vector<8x1xf32> to vector<8x8xf32>
    %32 = arith.divf %28, %31 : vector<8x8xf32>
    %cst_13 = arith.constant dense<0.000000e+00> : vector<8x32xf32>
    %33 = tpu.matmul %32, %11, %cst_13 {dimension_numbers = #tpu.dot_dimension_numbers<[1], [0], [0], [1], [0, 0, 1, 1], [], []>} : vector<8x8xf32>, vector<8x32xf32>, vector<8x32xf32> -> vector<8x32xf32>
    %34 = vector.extract_strided_slice %10 {offsets = [0, 16], sizes = [8, 8], strides = [1, 1]} : vector<8x96xf32> to vector<8x8xf32>
    %cst_14 = arith.constant dense<0xFF800000> : vector<8xf32>
    %35 = vector.multi_reduction <maximumf>, %34, %cst_14 [1] : vector<8x8xf32> to vector<8xf32>
    %36 = vector.shape_cast %35 : vector<8xf32> to vector<8x1xf32>
    %37 = vector.broadcast %36 : vector<8x1xf32> to vector<8x8xf32>
    %38 = arith.subf %34, %37 : vector<8x8xf32>
    %39 = math.exp %38 : vector<8x8xf32>
    %cst_15 = arith.constant dense<0.000000e+00> : vector<8xf32>
    %40 = vector.multi_reduction <add>, %39, %cst_15 [1] : vector<8x8xf32> to vector<8xf32>
    %41 = vector.shape_cast %40 : vector<8xf32> to vector<8x1xf32>
    %42 = vector.broadcast %41 : vector<8x1xf32> to vector<8x8xf32>
    %43 = arith.divf %39, %42 : vector<8x8xf32>
    %cst_16 = arith.constant dense<0.000000e+00> : vector<8x32xf32>
    %44 = tpu.matmul %43, %11, %cst_16 {dimension_numbers = #tpu.dot_dimension_numbers<[1], [0], [0], [1], [0, 0, 1, 1], [], []>} : vector<8x8xf32>, vector<8x32xf32>, vector<8x32xf32> -> vector<8x32xf32>
    %45 = vector.extract_strided_slice %10 {offsets = [0, 24], sizes = [8, 8], strides = [1, 1]} : vector<8x96xf32> to vector<8x8xf32>
    %cst_17 = arith.constant dense<0xFF800000> : vector<8xf32>
    %46 = vector.multi_reduction <maximumf>, %45, %cst_17 [1] : vector<8x8xf32> to vector<8xf32>
    %47 = vector.shape_cast %46 : vector<8xf32> to vector<8x1xf32>
    %48 = vector.broadcast %47 : vector<8x1xf32> to vector<8x8xf32>
    %49 = arith.subf %45, %48 : vector<8x8xf32>
    %50 = math.exp %49 : vector<8x8xf32>
    %cst_18 = arith.constant dense<0.000000e+00> : vector<8xf32>
    %51 = vector.multi_reduction <add>, %50, %cst_18 [1] : vector<8x8xf32> to vector<8xf32>
    %52 = vector.shape_cast %51 : vector<8xf32> to vector<8x1xf32>
    %53 = vector.broadcast %52 : vector<8x1xf32> to vector<8x8xf32>
    %54 = arith.divf %50, %53 : vector<8x8xf32>
    %cst_19 = arith.constant dense<0.000000e+00> : vector<8x32xf32>
    %55 = tpu.matmul %54, %11, %cst_19 {dimension_numbers = #tpu.dot_dimension_numbers<[1], [0], [0], [1], [0, 0, 1, 1], [], []>} : vector<8x8xf32>, vector<8x32xf32>, vector<8x32xf32> -> vector<8x32xf32>
    %56 = vector.extract_strided_slice %10 {offsets = [0, 32], sizes = [8, 8], strides = [1, 1]} : vector<8x96xf32> to vector<8x8xf32>
    %cst_20 = arith.constant dense<0xFF800000> : vector<8xf32>
    %57 = vector.multi_reduction <maximumf>, %56, %cst_20 [1] : vector<8x8xf32> to vector<8xf32>
    %58 = vector.shape_cast %57 : vector<8xf32> to vector<8x1xf32>
    %59 = vector.broadcast %58 : vector<8x1xf32> to vector<8x8xf32>
    %60 = arith.subf %56, %59 : vector<8x8xf32>
    %61 = math.exp %60 : vector<8x8xf32>
    %cst_21 = arith.constant dense<0.000000e+00> : vector<8xf32>
    %62 = vector.multi_reduction <add>, %61, %cst_21 [1] : vector<8x8xf32> to vector<8xf32>
    %63 = vector.shape_cast %62 : vector<8xf32> to vector<8x1xf32>
    %64 = vector.broadcast %63 : vector<8x1xf32> to vector<8x8xf32>
    %65 = arith.divf %61, %64 : vector<8x8xf32>
    %cst_22 = arith.constant dense<0.000000e+00> : vector<8x32xf32>
    %66 = tpu.matmul %65, %11, %cst_22 {dimension_numbers = #tpu.dot_dimension_numbers<[1], [0], [0], [1], [0, 0, 1, 1], [], []>} : vector<8x8xf32>, vector<8x32xf32>, vector<8x32xf32> -> vector<8x32xf32>
    %67 = vector.extract_strided_slice %10 {offsets = [0, 40], sizes = [8, 8], strides = [1, 1]} : vector<8x96xf32> to vector<8x8xf32>
    %cst_23 = arith.constant dense<0xFF800000> : vector<8xf32>
    %68 = vector.multi_reduction <maximumf>, %67, %cst_23 [1] : vector<8x8xf32> to vector<8xf32>
    %69 = vector.shape_cast %68 : vector<8xf32> to vector<8x1xf32>
    %70 = vector.broadcast %69 : vector<8x1xf32> to vector<8x8xf32>
    %71 = arith.subf %67, %70 : vector<8x8xf32>
    %72 = math.exp %71 : vector<8x8xf32>
    %cst_24 = arith.constant dense<0.000000e+00> : vector<8xf32>
    %73 = vector.multi_reduction <add>, %72, %cst_24 [1] : vector<8x8xf32> to vector<8xf32>
    %74 = vector.shape_cast %73 : vector<8xf32> to vector<8x1xf32>
    %75 = vector.broadcast %74 : vector<8x1xf32> to vector<8x8xf32>
    %76 = arith.divf %72, %75 : vector<8x8xf32>
    %cst_25 = arith.constant dense<0.000000e+00> : vector<8x32xf32>
    %77 = tpu.matmul %76, %11, %cst_25 {dimension_numbers = #tpu.dot_dimension_numbers<[1], [0], [0], [1], [0, 0, 1, 1], [], []>} : vector<8x8xf32>, vector<8x32xf32>, vector<8x32xf32> -> vector<8x32xf32>
    %78 = vector.extract_strided_slice %10 {offsets = [0, 48], sizes = [8, 8], strides = [1, 1]} : vector<8x96xf32> to vector<8x8xf32>
    %cst_26 = arith.constant dense<0xFF800000> : vector<8xf32>
    %79 = vector.multi_reduction <maximumf>, %78, %cst_26 [1] : vector<8x8xf32> to vector<8xf32>
    %80 = vector.shape_cast %79 : vector<8xf32> to vector<8x1xf32>
    %81 = vector.broadcast %80 : vector<8x1xf32> to vector<8x8xf32>
    %82 = arith.subf %78, %81 : vector<8x8xf32>
    %83 = math.exp %82 : vector<8x8xf32>
    %cst_27 = arith.constant dense<0.000000e+00> : vector<8xf32>
    %84 = vector.multi_reduction <add>, %83, %cst_27 [1] : vector<8x8xf32> to vector<8xf32>
    %85 = vector.shape_cast %84 : vector<8xf32> to vector<8x1xf32>
    %86 = vector.broadcast %85 : vector<8x1xf32> to vector<8x8xf32>
    %87 = arith.divf %83, %86 : vector<8x8xf32>
    %cst_28 = arith.constant dense<0.000000e+00> : vector<8x32xf32>
    %88 = tpu.matmul %87, %11, %cst_28 {dimension_numbers = #tpu.dot_dimension_numbers<[1], [0], [0], [1], [0, 0, 1, 1], [], []>} : vector<8x8xf32>, vector<8x32xf32>, vector<8x32xf32> -> vector<8x32xf32>
    %89 = vector.extract_strided_slice %10 {offsets = [0, 56], sizes = [8, 8], strides = [1, 1]} : vector<8x96xf32> to vector<8x8xf32>
    %cst_29 = arith.constant dense<0xFF800000> : vector<8xf32>
    %90 = vector.multi_reduction <maximumf>, %89, %cst_29 [1] : vector<8x8xf32> to vector<8xf32>
    %91 = vector.shape_cast %90 : vector<8xf32> to vector<8x1xf32>
    %92 = vector.broadcast %91 : vector<8x1xf32> to vector<8x8xf32>
    %93 = arith.subf %89, %92 : vector<8x8xf32>
    %94 = math.exp %93 : vector<8x8xf32>
    %cst_30 = arith.constant dense<0.000000e+00> : vector<8xf32>
    %95 = vector.multi_reduction <add>, %94, %cst_30 [1] : vector<8x8xf32> to vector<8xf32>
    %96 = vector.shape_cast %95 : vector<8xf32> to vector<8x1xf32>
    %97 = vector.broadcast %96 : vector<8x1xf32> to vector<8x8xf32>
    %98 = arith.divf %94, %97 : vector<8x8xf32>
    %cst_31 = arith.constant dense<0.000000e+00> : vector<8x32xf32>
    %99 = tpu.matmul %98, %11, %cst_31 {dimension_numbers = #tpu.dot_dimension_numbers<[1], [0], [0], [1], [0, 0, 1, 1], [], []>} : vector<8x8xf32>, vector<8x32xf32>, vector<8x32xf32> -> vector<8x32xf32>
    %100 = vector.extract_strided_slice %10 {offsets = [0, 64], sizes = [8, 8], strides = [1, 1]} : vector<8x96xf32> to vector<8x8xf32>
    %cst_32 = arith.constant dense<0xFF800000> : vector<8xf32>
    %101 = vector.multi_reduction <maximumf>, %100, %cst_32 [1] : vector<8x8xf32> to vector<8xf32>
    %102 = vector.shape_cast %101 : vector<8xf32> to vector<8x1xf32>
    %103 = vector.broadcast %102 : vector<8x1xf32> to vector<8x8xf32>
    %104 = arith.subf %100, %103 : vector<8x8xf32>
    %105 = math.exp %104 : vector<8x8xf32>
    %cst_33 = arith.constant dense<0.000000e+00> : vector<8xf32>
    %106 = vector.multi_reduction <add>, %105, %cst_33 [1] : vector<8x8xf32> to vector<8xf32>
    %107 = vector.shape_cast %106 : vector<8xf32> to vector<8x1xf32>
    %108 = vector.broadcast %107 : vector<8x1xf32> to vector<8x8xf32>
    %109 = arith.divf %105, %108 : vector<8x8xf32>
    %cst_34 = arith.constant dense<0.000000e+00> : vector<8x32xf32>
    %110 = tpu.matmul %109, %11, %cst_34 {dimension_numbers = #tpu.dot_dimension_numbers<[1], [0], [0], [1], [0, 0, 1, 1], [], []>} : vector<8x8xf32>, vector<8x32xf32>, vector<8x32xf32> -> vector<8x32xf32>
    %111 = vector.extract_strided_slice %10 {offsets = [0, 72], sizes = [8, 8], strides = [1, 1]} : vector<8x96xf32> to vector<8x8xf32>
    %cst_35 = arith.constant dense<0xFF800000> : vector<8xf32>
    %112 = vector.multi_reduction <maximumf>, %111, %cst_35 [1] : vector<8x8xf32> to vector<8xf32>
    %113 = vector.shape_cast %112 : vector<8xf32> to vector<8x1xf32>
    %114 = vector.broadcast %113 : vector<8x1xf32> to vector<8x8xf32>
    %115 = arith.subf %111, %114 : vector<8x8xf32>
    %116 = math.exp %115 : vector<8x8xf32>
    %cst_36 = arith.constant dense<0.000000e+00> : vector<8xf32>
    %117 = vector.multi_reduction <add>, %116, %cst_36 [1] : vector<8x8xf32> to vector<8xf32>
    %118 = vector.shape_cast %117 : vector<8xf32> to vector<8x1xf32>
    %119 = vector.broadcast %118 : vector<8x1xf32> to vector<8x8xf32>
    %120 = arith.divf %116, %119 : vector<8x8xf32>
    %cst_37 = arith.constant dense<0.000000e+00> : vector<8x32xf32>
    %121 = tpu.matmul %120, %11, %cst_37 {dimension_numbers = #tpu.dot_dimension_numbers<[1], [0], [0], [1], [0, 0, 1, 1], [], []>} : vector<8x8xf32>, vector<8x32xf32>, vector<8x32xf32> -> vector<8x32xf32>
    %122 = vector.extract_strided_slice %10 {offsets = [0, 80], sizes = [8, 8], strides = [1, 1]} : vector<8x96xf32> to vector<8x8xf32>
    %cst_38 = arith.constant dense<0xFF800000> : vector<8xf32>
    %123 = vector.multi_reduction <maximumf>, %122, %cst_38 [1] : vector<8x8xf32> to vector<8xf32>
    %124 = vector.shape_cast %123 : vector<8xf32> to vector<8x1xf32>
    %125 = vector.broadcast %124 : vector<8x1xf32> to vector<8x8xf32>
    %126 = arith.subf %122, %125 : vector<8x8xf32>
    %127 = math.exp %126 : vector<8x8xf32>
    %cst_39 = arith.constant dense<0.000000e+00> : vector<8xf32>
    %128 = vector.multi_reduction <add>, %127, %cst_39 [1] : vector<8x8xf32> to vector<8xf32>
    %129 = vector.shape_cast %128 : vector<8xf32> to vector<8x1xf32>
    %130 = vector.broadcast %129 : vector<8x1xf32> to vector<8x8xf32>
    %131 = arith.divf %127, %130 : vector<8x8xf32>
    %cst_40 = arith.constant dense<0.000000e+00> : vector<8x32xf32>
    %132 = tpu.matmul %131, %11, %cst_40 {dimension_numbers = #tpu.dot_dimension_numbers<[1], [0], [0], [1], [0, 0, 1, 1], [], []>} : vector<8x8xf32>, vector<8x32xf32>, vector<8x32xf32> -> vector<8x32xf32>
    %133 = vector.extract_strided_slice %10 {offsets = [0, 88], sizes = [8, 8], strides = [1, 1]} : vector<8x96xf32> to vector<8x8xf32>
    %cst_41 = arith.constant dense<0xFF800000> : vector<8xf32>
    %134 = vector.multi_reduction <maximumf>, %133, %cst_41 [1] : vector<8x8xf32> to vector<8xf32>
    %135 = vector.shape_cast %134 : vector<8xf32> to vector<8x1xf32>
    %136 = vector.broadcast %135 : vector<8x1xf32> to vector<8x8xf32>
    %137 = arith.subf %133, %136 : vector<8x8xf32>
    %138 = math.exp %137 : vector<8x8xf32>
    %cst_42 = arith.constant dense<0.000000e+00> : vector<8xf32>
    %139 = vector.multi_reduction <add>, %138, %cst_42 [1] : vector<8x8xf32> to vector<8xf32>
    %140 = vector.shape_cast %139 : vector<8xf32> to vector<8x1xf32>
    %141 = vector.broadcast %140 : vector<8x1xf32> to vector<8x8xf32>
    %142 = arith.divf %138, %141 : vector<8x8xf32>
    %cst_43 = arith.constant dense<0.000000e+00> : vector<8x32xf32>
    %143 = tpu.matmul %142, %11, %cst_43 {dimension_numbers = #tpu.dot_dimension_numbers<[1], [0], [0], [1], [0, 0, 1, 1], [], []>} : vector<8x8xf32>, vector<8x32xf32>, vector<8x32xf32> -> vector<8x32xf32>
    %144 = tpu.concatenate %22, %33, %44, %55, %66, %77, %88, %99, %110, %121, %132, %143 in 1 : vector<8x32xf32>, vector<8x32xf32>, vector<8x32xf32>, vector<8x32xf32>, vector<8x32xf32>, vector<8x32xf32>, vector<8x32xf32>, vector<8x32xf32>, vector<8x32xf32>, vector<8x32xf32>, vector<8x32xf32>, vector<8x32xf32> -> vector<8x384xf32>
    %c0_44 = arith.constant 0 : index
    %c0_45 = arith.constant 0 : index
    %145 = vector.load %arg8[%c0_44, %c0_45] : memref<8x384xf32, #tpu.memory_space<vmem>>, vector<8x384xf32>
    tpu.vector_store %arg8[%c0_44, %c0_45], %144 {strides = array<i32>} : memref<8x384xf32, #tpu.memory_space<vmem>>, vector<8x384xf32>,
    return
  }
  func.func @transform_0(%arg0: i32, %arg1: i32) -> (i32, i32) {
    %c0_i32 = arith.constant 0 : i32
    %c0_i32_0 = arith.constant 0 : i32
    return %arg0, %c0_i32 : i32, i32
  }
  func.func @transform_1(%arg0: i32, %arg1: i32) -> (i32, i32) {
    %c0_i32 = arith.constant 0 : i32
    %c0_i32_0 = arith.constant 0 : i32
    %c0_i32_1 = arith.constant 0 : i32
    return %c0_i32, %c0_i32_0 : i32, i32
  }
  func.func @transform_2(%arg0: i32, %arg1: i32) -> (i32, i32) {
    %c0_i32 = arith.constant 0 : i32
    %c0_i32_0 = arith.constant 0 : i32
    %c0_i32_1 = arith.constant 0 : i32
    return %c0_i32, %c0_i32_0 : i32, i32
  }
  func.func @transform_3(%arg0: i32, %arg1: i32) -> (i32, i32) {
    %c0_i32 = arith.constant 0 : i32
    %c0_i32_0 = arith.constant 0 : i32
    return %c0_i32, %arg1 : i32, i32
  }
  func.func @transform_4(%arg0: i32, %arg1: i32) -> (i32, i32) {
    %c0_i32 = arith.constant 0 : i32
    %c0_i32_0 = arith.constant 0 : i32
    %c0_i32_1 = arith.constant 0 : i32
    return %c0_i32, %c0_i32_0 : i32, i32
  }
  func.func @transform_5(%arg0: i32, %arg1: i32) -> (i32, i32) {
    %c0_i32 = arith.constant 0 : i32
    %c0_i32_0 = arith.constant 0 : i32
    %c0_i32_1 = arith.constant 0 : i32
    return %c0_i32, %c0_i32_0 : i32, i32
  }
  func.func @transform_6(%arg0: i32, %arg1: i32) -> (i32, i32) {
    %c0_i32 = arith.constant 0 : i32
    return %arg0, %arg1 : i32, i32
  }
}

</mosaic_0001>

<bundles_post_ra>
// kernel: promptg_forward.1
= control target key start
LH: loop header
LB: loop body
LE: loop exit
PB: predicated region body
PF: predicated region fallthrough
CT: control target
= control target key end

     0   :  { %11 = vsyncpa [#allocation4], 0  ;;  %s1261_s0 = inlined_call_operand.vmem [shape: f32[8,16], index: 0, kind: input, shape index: {}]   ;;  %s1262_s1 = inlined_call_operand.hbm [shape: f32[16,32], index: 1, kind: input, shape index: {}]   ;;  %s1263_s2 = inlined_call_operand.vmem [shape: f32[1,32], index: 2, kind: input, shape index: {}]   ;;  %s1264_s3 = inlined_call_operand.hbm [shape: f32[32,96], index: 3, kind: input, shape index: {}]   ;;  %s1265_s4 = inlined_call_operand.vmem [shape: f32[1,96], index: 4, kind: input, shape index: {}]   ;;  %s1266_s5 = inlined_call_operand.vmem [shape: f32[8,32], index: 5, kind: input, shape index: {}]   ;;  %s1267_s6 = inlined_call_operand.vmem [shape: f32[8,384], index: 6, kind: output, shape index: {}]  }
   0x1   :  { %s19_s23 = sshll.u32 %s1262_s1, 4  ;;  %s20_s23 = int_to_ptr.hbm [resolvable:$true] %s19_s23 }
   0x2   :  { %12 = vsyncpa [#allocation6], 0  ;;  %s995_s24 = smov [#allocation3]   ;;  %s34_s28 = sshll.u32 %s1264_s3, 4  ;;  %s35_s28 = int_to_ptr.hbm [resolvable:$true] %s34_s28 }
   0x3   :  { %s21_s25 = sshll.u32 %s995_s24, 4  ;;  %s996_s29 = smov 128   ;;  %s22_s25 = int_to_ptr.vmem [resolvable:$true] %s21_s25 }
   0x4   :  { %s997_s30 = smov 8   ;;  %s998_s7 = smov [#allocation5]  }
   0x5   :  { %27 = dma.hbm_to_vmem [thread:$0]  %s20_s23, 256, %s22_s25, [#allocation4], %s996_s29, %s996_s29, %s997_s30  }
   0x6   :  { %s36_s8 = sshll.u32 %s998_s7, 4  ;;  %s37_s8 = int_to_ptr.vmem [resolvable:$true] %s36_s8 }
   0x7   :  { %42 = dma.hbm_to_vmem [thread:$0]  %s35_s28, 512, %s37_s8, [#allocation6], %s996_s29, %s996_s29, %s997_s30  }
   0x8   :  { %991 = dma.done.wait [#allocation4], 256  }
   0x9   :  { %992 = vsyncadd [#allocation4], 4294967040 }
   0xa   :  { %993 = dma.done.wait [#allocation6], 512  }
   0xb   :  { %994 = vsyncadd [#allocation6], 4294966784  ;;  %v61_v0 = vld [vmem:[#allocation3] sm:$0xff]  ;;  %v62_v1 = vld [vmem:[#allocation3 + $0x8] sm:$0xff]  ;;  %vm69_vm0 = vcmask 130048   ;;  %vm130_vm5 = vcmask 261120  }
   0xc   :  { %v60_v2 = vld [vmem:[%s1261_s0] sm:$0xff]  ;;  %v64_v3 = vpack.c.bf16 %v62_v1, %v61_v0  ;;  %v135_v23 = vld [vmem:[#allocation5 + $0x10] sm:$0xff]  ;;  %v136_v24 = vld [vmem:[#allocation5 + $0x18] sm:$0xff]  ;;  %vm426_vm6 = vcmask 392512   ;;  %vm210_vm7 = vcmask 130112   ;;  %vm162_vm8 = vcmask 64512  }
   0xd   :  { %v63_v4 = vpack.c.bf16 %v60_v2, %v60_v2  ;;  %v891_v5 = vld [vmem:[%s1263_s2] ss:$0 sm:$0xff]  ;;  %v133_v25 = vld [vmem:[#allocation5] sm:$0xff]  ;;  %v139_v27 = vpack.c.bf16 %v136_v24, %v135_v23  ;;  %vm372_vm9 = vcmask 326912   ;;  %vm318_vm10 = vcmask 261312   ;;  %s1000_s11 = smov 96  }
   0xe   :  { %80 = vmatpush.bf16.msra.mxu0 %v64_v3  ;;  %v134_v28 = vld [vmem:[#allocation5 + $0x8] sm:$0xff]  ;;  %vm264_vm11 = vcmask 195712   ;;  %vm480_vm12 = vcmask 458112   ;;  %vm642_vm13 = vcmask 654912   ;;  %vm534_vm14 = vcmask 523712   ;;  %s1001_s12 = smov 112  }
   0xf   :  { %154 = vmatpush.bf16.msra.mxu1 %v139_v27  ;;  %v138_v30 = vpack.c.bf16 %v134_v28, %v133_v25  ;;  %v892_v56 = vld [vmem:[%s1265_s4] ss:$0 sm:$0xff]  ;;  %vm750_vm15 = vcmask 786112   ;;  %s999_s4 = smov 120   ;;  %s1002_s13 = smov 80  }
  0x10   :  { %s1003_s14 = smov 104   ;;  %s1004_s15 = smov 56  }
  0x11   :  { %860 = vmatmul.msk.bf16.vlgmr.msra.gmra.mxu0 %vm69_vm0, %v63_v4  ;;  %vm696_vm0 = vcmask 720512   ;;  %s1005_s16 = smov 40   ;;  %s1006_s17 = smov 88  }
  0x12   :  { %s1007_s18 = smov 64   ;;  %s1008_s19 = smov 72  }
  0x13   :  { %155 = vmatpush.bf16.msra.mxu1 %v138_v30  ;;  %s1009_s20 = smov 48  }
  0x8e   :  { %v82_v6 = vpop.f32.mrf.mxu0 }
  0x8f   :  { %v83_v7 = vadd.f32 %v891_v5, %v82_v6 }
  0x91   :  { %v87_v8 = vmul.f32 0.70710677, %v83_v7  ;;  %v86_v51 = vmul.f32 0.5, %v83_v7 }
  0x93   :  { %v88_v9 = vmul.f32 %v87_v8, %v87_v8 }
  0x95   :  { %v89_v10 = vmin.f32 %v88_v9, 16.0 }
  0x96   :  { %v84_v11 = vpop.f32.mrf.mxu0 }
  0x97   :  { %v90_v12 = vmul.f32 2.1237322e-06, %v89_v10  ;;  %v101_v13 = vmul.f32 3.8918573e-05, %v89_v10 }
  0x99   :  { %v91_v14 = vadd.f32 0.00028619796, %v90_v12  ;;  %v102_v15 = vadd.f32 0.001143296, %v101_v13 }
  0x9b   :  { %v92_v16 = vmul.f32 %v91_v14, %v89_v10  ;;  %v103_v17 = vmul.f32 %v102_v15, %v89_v10 }
  0x9d   :  { %v104_v18 = vadd.f32 0.014752088, %v103_v17  ;;  %v93_v19 = vadd.f32 0.0036580483, %v92_v16 }
  0x9f   :  { %v105_v20 = vmul.f32 %v104_v18, %v89_v10  ;;  %v94_v22 = vmul.f32 %v93_v19, %v89_v10 }
  0xa1   :  { %v106_v21 = vadd.f32 0.112945676, %v105_v20  ;;  %v95_v31 = vadd.f32 0.05243302, %v94_v22 }
  0xa3   :  { %v107_v26 = vmul.f32 %v106_v21, %v89_v10  ;;  %v96_v34 = vmul.f32 %v95_v31, %v89_v10 }
  0xa5   :  { %v108_v29 = vadd.f32 0.4994258, %v107_v26  ;;  %v97_v35 = vadd.f32 0.18741608, %v96_v34 }
  0xa7   :  { %v109_v32 = vmul.f32 %v108_v29, %v89_v10  ;;  %v98_v37 = vmul.f32 %v97_v35, %v89_v10 }
  0xa9   :  { %v110_v33 = vadd.f32 1.0, %v109_v32  ;;  %v99_v41 = vadd.f32 1.1283791, %v98_v37 }
  0xab   :  { %893 = vrcp.f32 %v110_v33  ;;  %v122_v40 = vand.u32 2147483648, %v110_v33  ;;  %v120_v43 = vand.u32 2147483647, %v110_v33  ;;  %vm116_vm2 = vweird.f32 %v110_v33 }
  0xac   :  { %v100_v46 = vmul.f32 %v99_v41, %v87_v8 }
  0xad   :  { %v123_v45 = vor.u32 1.1754944e-38, %v122_v40  ;;  %vm121_vm4 = vcmp.eq.f32.partialorder %v120_v43, 8.507059e+37 }
  0xb1   :  { %v894_v36 = vpop.eup %893 }
  0xb2   :  { %v112_v38 = vmul.f32 %v894_v36, %v110_v33  ;;  %vm117_vm1 = vweird.f32 %v894_v36 }
  0xb3   :  { %vm118_vm3 = vmor %vm116_vm2, %vm117_vm1  ;;  %vm588_vm1 = vcmask 589312  }
  0xb4   :  { %v113_v39 = vsub.f32 1.0, %v112_v38 }
  0xb6   :  { %v114_v42 = vmul.f32 %v894_v36, %v113_v39 }
  0xb8   :  { %v115_v44 = vadd.f32 %v894_v36, %v114_v42 }
  0xba   :  { %v119_v47 = vsel %vm118_vm3, %v894_v36, %v115_v44 }
  0xbb   :  { %v124_v48 = vsel %vm121_vm4, %v123_v45, %v119_v47 }
  0xbc   :  { %v125_v49 = vmul.f32 %v124_v48, %v100_v46 }
  0xbe   :  { %v861_v50 = vclamps-f32 %v125_v49, 1.0 }
  0xc0   :  { %v128_v52 = vadd.f32 1.0, %v861_v50 }
  0xc2   :  { %v129_v53 = vmul.f32 %v128_v52, %v86_v51 }
  0xc4   :  { %131 = vst.msk [vmem:[#allocation2] sm:$0xff] %vm130_vm5, %v129_v53 }
  0xcb   :  { %v132_v54 = vld [vmem:[#allocation2] sm:$0xff] }
  0xcc   :  { %v137_v55 = vpack.c.bf16 %v132_v54, %v132_v54 }
  0xce   :  { %862 = vmatmul.msk.bf16.vlgmr.msra.gmra.mxu1 %vm130_vm5, %v137_v55 }
 0x14b   :  { %v157_v57 = vpop.f32.mrf.mxu1 }
 0x14c   :  { %v1063_v58 = vadd.f32 %v892_v56, %v157_v57 }
 0x14e   :  { %v427_v59 = vsel %vm426_vm6, %v1063_v58, -inf  ;;  %v211_v60 = vsel %vm210_vm7, %v1063_v58, -inf  ;;  %v163_v61 = vsel %vm162_vm8, %v1063_v58, -inf  ;;  %v373_v63 = vsel %vm372_vm9, %v1063_v58, -inf }
 0x14f   :  { %428 = vmax.xlane.f32.xlu2 %v427_v59  ;;  %212 = vmax.xlane.f32.xlu1 %v211_v60  ;;  %v319_v0 = vsel %vm318_vm10, %v1063_v58, -inf  ;;  %v265_v1 = vsel %vm264_vm11, %v1063_v58, -inf  ;;  %v481_v2 = vsel %vm480_vm12, %v1063_v58, -inf  ;;  %v643_v3 = vsel %vm642_vm13, %v1063_v58, -inf }
 0x150   :  { %164 = vmax.xlane.f32.xlu0 %v163_v61  ;;  %v535_v4 = vsel %vm534_vm14, %v1063_v58, -inf  ;;  %v751_v5 = vsel %vm750_vm15, %v1063_v58, -inf  ;;  %v697_v6 = vsel %vm696_vm0, %v1063_v58, -inf  ;;  %v589_v7 = vsel %vm588_vm1, %v1063_v58, -inf }
 0x153   :  { %v159_v62 = vpop.f32.mrf.mxu1 }
 0x157   :  { %374 = vmax.xlane.f32.xlu2 %v373_v63  ;;  %320 = vmax.xlane.f32.xlu1 %v319_v0 }
 0x158   :  { %266 = vmax.xlane.f32.xlu0 %v265_v1 }
 0x15f   :  { %482 = vmax.xlane.f32.xlu1 %v481_v2 }
 0x160   :  { %644 = vmax.xlane.f32.xlu0 %v643_v3 }
 0x167   :  { %536 = vmax.xlane.f32.xlu1 %v535_v4 }
 0x168   :  { %752 = vmax.xlane.f32.xlu0 %v751_v5 }
 0x16f   :  { %698 = vmax.xlane.f32.xlu1 %v697_v6 }
 0x170   :  { %590 = vmax.xlane.f32.xlu0 %v589_v7 }
 0x1c2   :  { %v429_v8 = vpop.xlane.xlu2 %428  ;;  %v213_v9 = vpop.xlane.xlu1 %212 }
 0x1c3   :  { %v214_v10 = vsub.f32 %v1063_v58, %v213_v9  ;;  %v1079_v11 = vpop.xlane.xlu0 %164  ;;  %v430_v30 = vsub.f32 %v1063_v58, %v429_v8 }
 0x1c4   :  { %v166_v53 = vsub.f32 %v1063_v58, %v1079_v11 }
 0x1c5   :  { %v215_v12 = vmul.f32 1.442695, %v214_v10  ;;  %v431_v36 = vmul.f32 1.442695, %v430_v30 }
 0x1c6   :  { %v167_v54 = vmul.f32 1.442695, %v166_v53 }
 0x1c7   :  { %895 = vpow2.f32 %v215_v12 }
 0x1ca   :  { %v375_v13 = vpop.xlane.xlu2 %374  ;;  %v321_v14 = vpop.xlane.xlu1 %320 }
 0x1cb   :  { %v376_v15 = vsub.f32 %v1063_v58, %v375_v13  ;;  %v267_v16 = vpop.xlane.xlu0 %266  ;;  %v322_v21 = vsub.f32 %v1063_v58, %v321_v14  ;;  %v1151_v13 = vld [vmem:[%s1266_s5] sm:$0xff]  ;;  %s1010_s5 = smov 32  }
 0x1cc   :  { %v268_v17 = vsub.f32 %v1063_v58, %v267_v16  ;;  %205 = vmatpush.msra.mxu2 %v1151_v13  ;;  %259 = vmatpush.msra.mxu3 %v1151_v13 }
 0x1cd   :  { %v377_v18 = vmul.f32 1.442695, %v376_v15  ;;  %v1083_v19 = vpop.eup %895  ;;  %v323_v26 = vmul.f32 1.442695, %v322_v21  ;;  %529 = vmatpush.msrb.mxu0 %v1151_v13  ;;  %583 = vmatpush.msrb.mxu1 %v1151_v13 }
 0x1ce   :  { %v269_v20 = vmul.f32 1.442695, %v268_v17  ;;  %218 = vrot.lane.b32.xlu1 %v1083_v19, %s999_s4  ;;  %367 = vmatpush.msrb.mxu3 %v1151_v13 }
 0x1cf   :  { %897 = vpow2.f32 %v377_v18  ;;  %313 = vmatpush.msrb.mxu2 %v1151_v13  ;;  %745 = vmatpush.msra.mxu0 %v1151_v13 }
 0x1d0   :  { %899 = vpow2.f32 %v269_v20  ;;  %799 = vmatpush.msra.mxu1 %v1151_v13 }
 0x1d2   :  { %v483_v22 = vpop.xlane.xlu1 %482 }
 0x1d3   :  { %v484_v23 = vsub.f32 %v1063_v58, %v483_v22  ;;  %v645_v24 = vpop.xlane.xlu0 %644 }
 0x1d4   :  { %v646_v29 = vsub.f32 %v1063_v58, %v645_v24 }
 0x1d5   :  { %v1089_v25 = vpop.eup %897  ;;  %v485_v27 = vmul.f32 1.442695, %v484_v23 }
 0x1d6   :  { %v1091_v28 = vpop.eup %899  ;;  %380 = vrot.lane.b32.xlu1 %v1089_v25, %s1000_s11  ;;  %v647_v31 = vmul.f32 1.442695, %v646_v29 }
 0x1d7   :  { %901 = vpow2.f32 %v485_v27  ;;  %272 = vrot.lane.b32.xlu0 %v1091_v28, %s1001_s12 }
 0x1d8   :  { %903 = vpow2.f32 %v323_v26 }
 0x1d9   :  { %905 = vpow2.f32 %v647_v31 }
 0x1da   :  { %v537_v33 = vpop.xlane.xlu1 %536 }
 0x1db   :  { %v753_v32 = vpop.xlane.xlu0 %752  ;;  %v538_v39 = vsub.f32 %v1063_v58, %v537_v33 }
 0x1dc   :  { %v754_v34 = vsub.f32 %v1063_v58, %v753_v32 }
 0x1dd   :  { %v1100_v35 = vpop.eup %901  ;;  %v539_v43 = vmul.f32 1.442695, %v538_v39 }
 0x1de   :  { %v755_v37 = vmul.f32 1.442695, %v754_v34  ;;  %v1102_v38 = vpop.eup %903  ;;  %488 = vrot.lane.b32.xlu1 %v1100_v35, %s1002_s13 }
 0x1df   :  { %326 = vrot.lane.b32.xlu0 %v1102_v38, %s1003_s14  ;;  %v1110_v42 = vpop.eup %905 }
 0x1e0   :  { %907 = vpow2.f32 %v755_v37 }
 0x1e1   :  { %909 = vpow2.f32 %v431_v36 }
 0x1e2   :  { %v699_v45 = vpop.xlane.xlu1 %698 }
 0x1e3   :  { %v591_v40 = vpop.xlane.xlu0 %590  ;;  %v700_v48 = vsub.f32 %v1063_v58, %v699_v45 }
 0x1e4   :  { %v592_v41 = vsub.f32 %v1063_v58, %v591_v40 }
 0x1e5   :  { %v701_v49 = vmul.f32 1.442695, %v700_v48 }
 0x1e6   :  { %v1112_v44 = vpop.eup %907  ;;  %v593_v46 = vmul.f32 1.442695, %v592_v41  ;;  %650 = vrot.lane.b32.xlu1 %v1110_v42, %s1004_s15 }
 0x1e7   :  { %v1114_v47 = vpop.eup %909  ;;  %758 = vrot.lane.b32.xlu2 %v1112_v44, %s1005_s16 }
 0x1e8   :  { %911 = vpow2.f32 %v593_v46  ;;  %434 = vrot.lane.b32.xlu0 %v1114_v47, %s1006_s17 }
 0x1e9   :  { %913 = vpow2.f32 %v539_v43 }
 0x1ea   :  { %915 = vpow2.f32 %v701_v49 }
 0x1eb   :  { %917 = vpow2.f32 %v167_v54 }
 0x1ee   :  { %v1123_v50 = vpop.eup %911 }
 0x1ef   :  { %v1125_v51 = vpop.eup %913  ;;  %596 = vrot.lane.b32.xlu1 %v1123_v50, %s1007_s18 }
 0x1f0   :  { %542 = vrot.lane.b32.xlu0 %v1125_v51, %s1008_s19  ;;  %v1131_v52 = vpop.eup %915 }
 0x1f1   :  { %v918_v55 = vpop.eup %917 }
 0x1f2   :  { %v169_v56 = vsel %vm162_vm8, %v918_v55, 0.0 }
 0x1f8   :  { %704 = vrot.lane.b32.xlu0 %v1131_v52, %s1009_s20 }
 0x222   :  { %170 = vadd.xlane.f32.xlu0 %v169_v56 }
 0x240   :  { %v219_v57 = vpop.permute.xlu1 %218 }
 0x241   :  { %v221_v59 = vsel %vm162_vm8, %v219_v57, 0.0  ;;  %v759_v11 = vpop.permute.xlu2 %758 }
 0x242   :  { %222 = vadd.xlane.f32.xlu2 %v221_v59  ;;  %v761_v12 = vsel %vm162_vm8, %v759_v11, 0.0 }
 0x248   :  { %v381_v60 = vpop.permute.xlu1 %380 }
 0x249   :  { %v273_v61 = vpop.permute.xlu0 %272  ;;  %v383_v62 = vsel %vm162_vm8, %v381_v60, 0.0 }
 0x24a   :  { %384 = vadd.xlane.f32.xlu1 %v383_v62  ;;  %v275_v63 = vsel %vm162_vm8, %v273_v61, 0.0 }
 0x24b   :  { %276 = vadd.xlane.f32.xlu2 %v275_v63 }
 0x250   :  { %v489_v0 = vpop.permute.xlu1 %488 }
 0x251   :  { %v327_v58 = vpop.permute.xlu0 %326  ;;  %v491_v1 = vsel %vm162_vm8, %v489_v0, 0.0 }
 0x252   :  { %v329_v2 = vsel %vm162_vm8, %v327_v58, 0.0 }
 0x253   :  { %492 = vadd.xlane.f32.xlu2 %v491_v1  ;;  %330 = vadd.xlane.f32.xlu0 %v329_v2 }
 0x258   :  { %v651_v7 = vpop.permute.xlu1 %650 }
 0x259   :  { %v653_v9 = vsel %vm162_vm8, %v651_v7, 0.0 }
 0x25a   :  { %v435_v3 = vpop.permute.xlu0 %434 }
 0x25b   :  { %v437_v4 = vsel %vm162_vm8, %v435_v3, 0.0 }
 0x25c   :  { %438 = vadd.xlane.f32.xlu0 %v437_v4 }
 0x261   :  { %v1163_v29 = vpop.permute.xlu1 %596 }
 0x262   :  { %v543_v5 = vpop.permute.xlu0 %542 }
 0x263   :  { %v545_v6 = vsel %vm162_vm8, %v543_v5, 0.0 }
 0x264   :  { %546 = vadd.xlane.f32.xlu0 %v545_v6 }
 0x26a   :  { %v705_v8 = vpop.permute.xlu0 %704 }
 0x26b   :  { %v707_v10 = vsel %vm162_vm8, %v705_v8, 0.0 }
 0x26c   :  { %654 = vadd.xlane.f32.xlu0 %v653_v9  ;;  %708 = vadd.xlane.f32.xlu2 %v707_v10 }
 0x274   :  { %762 = vadd.xlane.f32.xlu0 %v761_v12 }
 0x295   :  { %v171_v14 = vpop.xlane.xlu0 %170 }
 0x296   :  { %919 = vrcp.f32 %v171_v14  ;;  %v183_v18 = vand.u32 2147483648, %v171_v14  ;;  %v181_v21 = vand.u32 2147483647, %v171_v14  ;;  %vm177_vm3 = vweird.f32 %v171_v14 }
 0x298   :  { %v184_v23 = vor.u32 1.1754944e-38, %v183_v18  ;;  %vm182_vm6 = vcmp.eq.f32.partialorder %v181_v21, 8.507059e+37 }
 0x29c   :  { %v920_v15 = vpop.eup %919 }
 0x29d   :  { %v173_v16 = vmul.f32 %v920_v15, %v171_v14  ;;  %vm178_vm2 = vweird.f32 %v920_v15 }
 0x29e   :  { %vm179_vm4 = vmor %vm177_vm3, %vm178_vm2 }
 0x29f   :  { %v174_v17 = vsub.f32 1.0, %v173_v16 }
 0x2a1   :  { %v175_v20 = vmul.f32 %v920_v15, %v174_v17 }
 0x2a3   :  { %v176_v22 = vadd.f32 %v920_v15, %v175_v20 }
 0x2a5   :  { %v180_v24 = vsel %vm179_vm4, %v920_v15, %v176_v22 }
 0x2a6   :  { %v185_v26 = vsel %vm182_vm6, %v184_v23, %v180_v24 }
 0x2a7   :  { %v186_v27 = vmul.f32 %v918_v55, %v185_v26 }
 0x2a9   :  { %863 = vmatmul.msk.f32.vlgmr.msra.gmra.mxu2 %vm162_vm8, %v186_v27 }
 0x2aa   :  { %421 = vmatpush.msra.mxu2 %v1151_v13 }
 0x2b5   :  { %v223_v30 = vpop.xlane.xlu2 %222 }
 0x2b6   :  { %921 = vrcp.f32 %v223_v30  ;;  %v235_v37 = vand.u32 2147483648, %v223_v30  ;;  %v233_v40 = vand.u32 2147483647, %v223_v30  ;;  %vm229_vm9 = vweird.f32 %v223_v30 }
 0x2b8   :  { %v236_v45 = vor.u32 1.1754944e-38, %v235_v37  ;;  %vm234_vm11 = vcmp.eq.f32.partialorder %v233_v40, 8.507059e+37 }
 0x2bc   :  { %v922_v31 = vpop.eup %921 }
 0x2bd   :  { %v225_v32 = vmul.f32 %v922_v31, %v223_v30  ;;  %v1165_v33 = vpop.xlane.xlu1 %384  ;;  %vm230_vm7 = vweird.f32 %v922_v31 }
 0x2be   :  { %923 = vrcp.f32 %v1165_v33  ;;  %v277_v34 = vpop.xlane.xlu2 %276  ;;  %vm231_vm10 = vmor %vm229_vm9, %vm230_vm7  ;;  %v397_v8 = vand.u32 2147483648, %v1165_v33  ;;  %vm391_vm1 = vweird.f32 %v1165_v33  ;;  %v395_v14 = vand.u32 2147483647, %v1165_v33 }
 0x2bf   :  { %v226_v36 = vsub.f32 1.0, %v225_v32  ;;  %925 = vrcp.f32 %v277_v34  ;;  %v289_v62 = vand.u32 2147483648, %v277_v34  ;;  %v287_v63 = vand.u32 2147483647, %v277_v34 }
 0x2c0   :  { %vm283_vm13 = vweird.f32 %v277_v34  ;;  %v398_v22 = vor.u32 1.1754944e-38, %v397_v8  ;;  %vm396_vm6 = vcmp.eq.f32.partialorder %v395_v14, 8.507059e+37 }
 0x2c1   :  { %v227_v39 = vmul.f32 %v922_v31, %v226_v36  ;;  %v290_v3 = vor.u32 1.1754944e-38, %v289_v62  ;;  %vm288_vm15 = vcmp.eq.f32.partialorder %v287_v63, 8.507059e+37 }
 0x2c3   :  { %v228_v41 = vadd.f32 %v922_v31, %v227_v39 }
 0x2c4   :  { %v924_v43 = vpop.eup %923 }
 0x2c5   :  { %v926_v46 = vpop.eup %925  ;;  %v387_v48 = vmul.f32 %v924_v43, %v1165_v33  ;;  %v232_v49 = vsel %vm231_vm10, %v922_v31, %v228_v41  ;;  %vm392_vm0 = vweird.f32 %v924_v43 }
 0x2c6   :  { %v279_v53 = vmul.f32 %v926_v46, %v277_v34  ;;  %v1169_v54 = vpop.xlane.xlu2 %492  ;;  %v331_v55 = vpop.xlane.xlu0 %330  ;;  %v237_v56 = vsel %vm234_vm11, %v236_v45, %v232_v49  ;;  %vm284_vm12 = vweird.f32 %v926_v46  ;;  %vm1182_vm2 = vmor %vm391_vm1, %vm392_vm0 }
 0x2c7   :  { %v388_v57 = vsub.f32 1.0, %v387_v48  ;;  %927 = vrcp.f32 %v1169_v54  ;;  %v238_v60 = vmul.f32 %v1083_v19, %v237_v56  ;;  %vm285_vm14 = vmor %vm283_vm13, %vm284_vm12  ;;  %v343_v15 = vand.u32 2147483648, %v331_v55 }
 0x2c8   :  { %v280_v59 = vsub.f32 1.0, %v279_v53  ;;  %929 = vrcp.f32 %v331_v55  ;;  %v341_v17 = vand.u32 2147483647, %v331_v55  ;;  %vm337_vm4 = vweird.f32 %v331_v55 }
 0x2c9   :  { %v389_v0 = vmul.f32 %v924_v43, %v388_v57  ;;  %240 = vrot.lane.b32.xlu2 %v238_v60, %s999_s4  ;;  %v344_v24 = vor.u32 1.1754944e-38, %v343_v15  ;;  %v505_v33 = vand.u32 2147483648, %v1169_v54  ;;  %vm499_vm11 = vweird.f32 %v1169_v54 }
 0x2ca   :  { %v281_v61 = vmul.f32 %v926_v46, %v280_v59  ;;  %vm342_vm9 = vcmp.eq.f32.partialorder %v341_v17, 8.507059e+37  ;;  %v503_v40 = vand.u32 2147483647, %v1169_v54 }
 0x2cb   :  { %v390_v7 = vadd.f32 %v924_v43, %v389_v0  ;;  %v506_v48 = vor.u32 1.1754944e-38, %v505_v33 }
 0x2cc   :  { %v282_v58 = vadd.f32 %v926_v46, %v281_v61 }
 0x2cd   :  { %v1174_v1 = vpop.eup %927  ;;  %v394_v21 = vsel %vm1182_vm2, %v924_v43, %v390_v7 }
 0x2ce   :  { %v930_v2 = vpop.eup %929  ;;  %v495_v4 = vmul.f32 %v1174_v1, %v1169_v54  ;;  %v286_v6 = vsel %vm285_vm14, %v926_v46, %v282_v58  ;;  %v399_v30 = vsel %vm396_vm6, %v398_v22, %v394_v21  ;;  %vm500_vm10 = vweird.f32 %v1174_v1 }
 0x2cf   :  { %v439_v5 = vpop.xlane.xlu0 %438  ;;  %v333_v19 = vmul.f32 %v930_v2, %v331_v55  ;;  %v291_v10 = vsel %vm288_vm15, %v290_v3, %v286_v6  ;;  %vm338_vm3 = vweird.f32 %v930_v2  ;;  %v400_v37 = vmul.f32 %v1089_v25, %v399_v30  ;;  %vm501_vm12 = vmor %vm499_vm11, %vm500_vm10 }
 0x2d0   :  { %931 = vrcp.f32 %v439_v5  ;;  %v496_v9 = vsub.f32 1.0, %v495_v4  ;;  %v292_v12 = vmul.f32 %v1091_v28, %v291_v10  ;;  %vm339_vm7 = vmor %vm337_vm4, %vm338_vm3  ;;  %v451_v43 = vand.u32 2147483648, %v439_v5 }
 0x2d1   :  { %v334_v11 = vsub.f32 1.0, %v333_v19  ;;  %v449_v46 = vand.u32 2147483647, %v439_v5  ;;  %vm445_vm14 = vweird.f32 %v439_v5  ;;  %vm504_vm15 = vcmp.eq.f32.partialorder %v503_v40, 8.507059e+37 }
 0x2d2   :  { %v497_v18 = vmul.f32 %v1174_v1, %v496_v9  ;;  %294 = vrot.lane.b32.xlu1 %v292_v12, %s1001_s12  ;;  %v452_v25 = vor.u32 1.1754944e-38, %v451_v43 }
 0x2d3   :  { %v335_v20 = vmul.f32 %v930_v2, %v334_v11  ;;  %vm450_vm1 = vcmp.eq.f32.partialorder %v449_v46, 8.507059e+37 }
 0x2d4   :  { %v498_v32 = vadd.f32 %v1174_v1, %v497_v18 }
 0x2d5   :  { %v336_v28 = vadd.f32 %v930_v2, %v335_v20 }
 0x2d6   :  { %v932_v23 = vpop.eup %931  ;;  %v502_v45 = vsel %vm501_vm12, %v1174_v1, %v498_v32 }
 0x2d7   :  { %v441_v26 = vmul.f32 %v932_v23, %v439_v5  ;;  %v1190_v27 = vpop.xlane.xlu0 %546  ;;  %v340_v31 = vsel %vm339_vm7, %v930_v2, %v336_v28  ;;  %vm446_vm13 = vweird.f32 %v932_v23  ;;  %v507_v54 = vsel %vm504_vm15, %v506_v48, %v502_v45 }
 0x2d8   :  { %v345_v36 = vsel %vm342_vm9, %v344_v24, %v340_v31  ;;  %vm447_vm0 = vmor %vm445_vm14, %vm446_vm13  ;;  %v508_v57 = vmul.f32 %v1100_v35, %v507_v54  ;;  %v599_v31 = vsel %vm162_vm8, %v1163_v29, 0.0 }
 0x2d9   :  { %v442_v34 = vsub.f32 1.0, %v441_v26  ;;  %v346_v39 = vmul.f32 %v1102_v38, %v345_v36 }
 0x2da   :  { %402 = vrot.lane.b32.xlu1 %v400_v37, %s1000_s11 }
 0x2db   :  { %v443_v41 = vmul.f32 %v932_v23, %v442_v34  ;;  %348 = vrot.lane.b32.xlu2 %v346_v39, %s1003_s14 }
 0x2dd   :  { %v444_v49 = vadd.f32 %v932_v23, %v443_v41 }
 0x2df   :  { %v709_v38 = vpop.xlane.xlu2 %708  ;;  %v655_v53 = vpop.xlane.xlu0 %654  ;;  %v448_v55 = vsel %vm447_vm0, %v932_v23, %v444_v49 }
 0x2e0   :  { %933 = vrcp.f32 %v709_v38  ;;  %v453_v56 = vsel %vm450_vm1, %v452_v25, %v448_v55  ;;  %v667_v2 = vand.u32 2147483648, %v655_v53  ;;  %v665_v5 = vand.u32 2147483647, %v655_v53 }
 0x2e1   :  { %935 = vrcp.f32 %v655_v53  ;;  %v454_v59 = vmul.f32 %v1114_v47, %v453_v56  ;;  %vm661_vm3 = vweird.f32 %v655_v53  ;;  %v721_v9 = vand.u32 2147483648, %v709_v38 }
 0x2e2   :  { %510 = vrot.lane.b32.xlu1 %v508_v57, %s1002_s13  ;;  %v668_v6 = vor.u32 1.1754944e-38, %v667_v2  ;;  %vm666_vm6 = vcmp.eq.f32.partialorder %v665_v5, 8.507059e+37  ;;  %vm715_vm9 = vweird.f32 %v709_v38  ;;  %v719_v15 = vand.u32 2147483647, %v709_v38 }
 0x2e3   :  { %456 = vrot.lane.b32.xlu0 %v454_v59, %s1006_s17  ;;  %v722_v20 = vor.u32 1.1754944e-38, %v721_v9  ;;  %vm553_vm1 = vweird.f32 %v1190_v27 }
 0x2e4   :  { %vm720_vm13 = vcmp.eq.f32.partialorder %v719_v15, 8.507059e+37 }
 0x2e6   :  { %v934_v60 = vpop.eup %933 }
 0x2e7   :  { %v936_v61 = vpop.eup %935  ;;  %v711_v62 = vmul.f32 %v934_v60, %v709_v38  ;;  %v763_v63 = vpop.xlane.xlu0 %762  ;;  %vm716_vm7 = vweird.f32 %v934_v60 }
 0x2e8   :  { %v657_v0 = vmul.f32 %v936_v61, %v655_v53  ;;  %937 = vrcp.f32 %v763_v63  ;;  %vm662_vm2 = vweird.f32 %v936_v61  ;;  %v775_v12 = vand.u32 2147483648, %v763_v63  ;;  %vm717_vm10 = vmor %vm715_vm9, %vm716_vm7 }
 0x2e9   :  { %v712_v58 = vsub.f32 1.0, %v711_v62  ;;  %vm663_vm4 = vmor %vm661_vm3, %vm662_vm2  ;;  %v773_v17 = vand.u32 2147483647, %v763_v63  ;;  %vm769_vm12 = vweird.f32 %v763_v63  ;;  %939 = vrcp.f32 %v1190_v27 }
 0x2ea   :  { %v658_v1 = vsub.f32 1.0, %v657_v0  ;;  %v776_v22 = vor.u32 1.1754944e-38, %v775_v12 }
 0x2eb   :  { %v713_v3 = vmul.f32 %v934_v60, %v712_v58  ;;  %vm774_vm15 = vcmp.eq.f32.partialorder %v773_v17, 8.507059e+37 }
 0x2ec   :  { %v659_v4 = vmul.f32 %v936_v61, %v658_v1 }
 0x2ed   :  { %v714_v8 = vadd.f32 %v934_v60, %v713_v3 }
 0x2ee   :  { %v938_v35 = vpop.eup %937  ;;  %v660_v47 = vadd.f32 %v936_v61, %v659_v4 }
 0x2ef   :  { %v765_v19 = vmul.f32 %v938_v35, %v763_v63  ;;  %vm770_vm11 = vweird.f32 %v938_v35  ;;  %v718_v18 = vsel %vm717_vm10, %v934_v60, %v714_v8  ;;  %v940_v30 = vpop.eup %939  ;;  %vm843_vm10 = vcmask 785408  }
 0x2f0   :  { %v664_v7 = vsel %vm663_vm4, %v936_v61, %v660_v47  ;;  %vm771_vm14 = vmor %vm769_vm12, %vm770_vm11  ;;  %v723_v23 = vsel %vm720_vm13, %v722_v20, %v718_v18  ;;  %v549_v32 = vmul.f32 %v940_v30, %v1190_v27  ;;  %vm554_vm0 = vweird.f32 %v940_v30 }
 0x2f1   :  { %v766_v10 = vsub.f32 1.0, %v765_v19  ;;  %v669_v11 = vsel %vm666_vm6, %v668_v6, %v664_v7  ;;  %v724_v26 = vmul.f32 %v1131_v52, %v723_v23  ;;  %v557_v52 = vand.u32 2147483647, %v1190_v27  ;;  %vm555_vm2 = vmor %vm553_vm1, %vm554_vm0 }
 0x2f2   :  { %v670_v14 = vmul.f32 %v1110_v42, %v669_v11  ;;  %v550_v33 = vsub.f32 1.0, %v549_v32  ;;  %vm841_vm11 = vcmask 523264  }
 0x2f3   :  { %v767_v16 = vmul.f32 %v938_v35, %v766_v10  ;;  %vm558_vm3 = vcmp.eq.f32.partialorder %v557_v52, 8.507059e+37 }
 0x2f4   :  { %672 = vrot.lane.b32.xlu1 %v670_v14, %s1004_s15  ;;  %v551_v34 = vmul.f32 %v940_v30, %v550_v33 }
 0x2f5   :  { %v768_v21 = vadd.f32 %v938_v35, %v767_v16 }
 0x2f6   :  { %v552_v36 = vadd.f32 %v940_v30, %v551_v34 }
 0x2f7   :  { %v772_v28 = vsel %vm771_vm14, %v938_v35, %v768_v21 }
 0x2f8   :  { %v777_v24 = vsel %vm774_vm15, %v776_v22, %v772_v28  ;;  %v556_v37 = vsel %vm555_vm2, %v940_v30, %v552_v36 }
 0x2f9   :  { %v778_v42 = vmul.f32 %v1112_v44, %v777_v24  ;;  %v559_v44 = vand.u32 2147483648, %v1190_v27 }
 0x2fb   :  { %780 = vrot.lane.b32.xlu0 %v778_v42, %s1005_s16  ;;  %v560_v39 = vor.u32 1.1754944e-38, %v559_v44 }
 0x2fc   :  { %726 = vrot.lane.b32.xlu1 %v724_v26, %s1009_s20 }
 0x2fd   :  { %v561_v40 = vsel %vm558_vm3, %v560_v39, %v556_v37 }
 0x2fe   :  { %v562_v29 = vmul.f32 %v1125_v51, %v561_v40 }
 0x304   :  { %600 = vadd.xlane.f32.xlu2 %v599_v31 }
 0x31c   :  { %564 = vrot.lane.b32.xlu2 %v562_v29, %s1008_s19 }
 0x323   :  { %v241_v41 = vpop.permute.xlu2 %240 }
 0x324   :  { %864 = vmatmul.msk.f32.vlgmr.msra.gmra.mxu3 %vm162_vm8, %v241_v41 }
 0x325   :  { %475 = vmatpush.msra.mxu3 %v1151_v13 }
 0x32c   :  { %v207_v2 = vpop.f32.mrf.mxu2 }
 0x335   :  { %v349_v43 = vpop.permute.xlu2 %348 }
 0x336   :  { %866 = vmatmul.msk.f32.vlgmr.msrb.gmra.mxu3 %vm162_vm8, %v349_v43 }
 0x337   :  { %691 = vmatpush.msrb.mxu3 %v1151_v13 }
 0x344   :  { %v295_v27 = vpop.permute.xlu1 %294 }
 0x345   :  { %865 = vmatmul.msk.f32.vlgmr.msrb.gmra.mxu2 %vm162_vm8, %v295_v27 }
 0x346   :  { %637 = vmatpush.msrb.mxu2 %v1151_v13 }
 0x34c   :  { %v403_v45 = vpop.permute.xlu1 %402 }
 0x34d   :  { %867 = vmatmul.msk.f32.vlgmr.msra.gmra.mxu2 %vm162_vm8, %v403_v45 }
 0x354   :  { %v511_v51 = vpop.permute.xlu1 %510 }
 0x355   :  { %v457_v46 = vpop.permute.xlu0 %456  ;;  %869 = vmatmul.msk.f32.vlgmr.msrb.gmra.mxu0 %vm162_vm8, %v511_v51 }
 0x356   :  { %868 = vmatmul.msk.f32.vlgmr.msra.gmra.mxu3 %vm162_vm8, %v457_v46 }
 0x366   :  { %v673_v48 = vpop.permute.xlu1 %672 }
 0x367   :  { %872 = vmatmul.msk.f32.vlgmr.msrb.gmra.mxu3 %vm162_vm8, %v673_v48 }
 0x36d   :  { %v781_v61 = vpop.permute.xlu0 %780 }
 0x36e   :  { %v727_v49 = vpop.permute.xlu1 %726 }
 0x36f   :  { %873 = vmatmul.msk.f32.vlgmr.msra.gmra.mxu0 %vm162_vm8, %v727_v49 }
 0x377   :  { %v601_v25 = vpop.xlane.xlu2 %600 }
 0x378   :  { %941 = vrcp.f32 %v601_v25  ;;  %v613_v55 = vand.u32 2147483648, %v601_v25  ;;  %v611_v57 = vand.u32 2147483647, %v601_v25  ;;  %vm607_vm6 = vweird.f32 %v601_v25 }
 0x37a   :  { %v614_v60 = vor.u32 1.1754944e-38, %v613_v55  ;;  %vm612_vm9 = vcmp.eq.f32.partialorder %v611_v57, 8.507059e+37 }
 0x37e   :  { %v942_v38 = vpop.eup %941 }
 0x37f   :  { %v603_v53 = vmul.f32 %v942_v38, %v601_v25  ;;  %v565_v13 = vpop.permute.xlu2 %564  ;;  %vm608_vm4 = vweird.f32 %v942_v38 }
 0x380   :  { %870 = vmatmul.msk.f32.vlgmr.msrb.gmra.mxu1 %vm162_vm8, %v565_v13  ;;  %vm609_vm7 = vmor %vm607_vm6, %vm608_vm4 }
 0x381   :  { %v604_v54 = vsub.f32 1.0, %v603_v53 }
 0x383   :  { %v605_v56 = vmul.f32 %v942_v38, %v604_v54 }
 0x385   :  { %v606_v59 = vadd.f32 %v942_v38, %v605_v56 }
 0x387   :  { %v610_v62 = vsel %vm609_vm7, %v942_v38, %v606_v59 }
 0x388   :  { %874 = vmatmul.msk.f32.vlgmr.msra.gmra.mxu1 %vm162_vm8, %v781_v61  ;;  %v615_v63 = vsel %vm612_vm9, %v614_v60, %v610_v62 }
 0x389   :  { %v616_v0 = vmul.f32 %v1123_v50, %v615_v63 }
 0x38b   :  { %618 = vrot.lane.b32.xlu1 %v616_v0, %s1007_s18 }
 0x3a7   :  { %v261_v58 = vpop.f32.mrf.mxu3 }
 0x3a8   :  { %805 = vrot.lane.b32.xlu0 %v261_v58, %s1010_s5 }
 0x3b9   :  { %v369_v1 = vpop.f32.mrf.mxu3 }
 0x3c8   :  { %v315_v5 = vpop.f32.mrf.mxu2 }
 0x3d0   :  { %v423_v10 = vpop.f32.mrf.mxu2 }
 0x3d2   :  { %v531_v3 = vpop.f32.mrf.mxu0 }
 0x3d3   :  { %821 = vrot.lane.b32.xlu2 %v531_v3, %s1007_s18 }
 0x3d9   :  { %v477_v4 = vpop.f32.mrf.mxu3 }
 0x3da   :  { %817 = vrot.lane.b32.xlu0 %v477_v4, %s1010_s5 }
 0x3db   :  { %809 = vrot.lane.b32.xlu2 %v315_v5, %s1007_s18 }
 0x3ea   :  { %v693_v35 = vpop.f32.mrf.mxu3 }
 0x3eb   :  { %829 = vrot.lane.b32.xlu0 %v693_v35, %s1010_s5 }
 0x3ec   :  { %v747_v47 = vpop.f32.mrf.mxu0 }
 0x3ed   :  { %833 = vrot.lane.b32.xlu2 %v747_v47, %s1007_s18 }
 0x3fd   :  { %v585_v50 = vpop.f32.mrf.mxu1  ;;  %v619_v6 = vpop.permute.xlu1 %618 }
 0x3fe   :  { %825 = vrot.lane.b32.xlu1 %v585_v50, %s1000_s11  ;;  %871 = vmatmul.msk.f32.vlgmr.msrb.gmra.mxu2 %vm162_vm8, %v619_v6 }
 0x405   :  { %v801_v19 = vpop.f32.mrf.mxu1 }
 0x406   :  { %813 = vrot.lane.b32.xlu1 %v369_v1, %s1000_s11 }
 0x40e   :  { %837 = vrot.lane.b32.xlu1 %v801_v19, %s1000_s11 }
 0x41a   :  { %v806_v7 = vpop.permute.xlu0 %805 }
 0x41b   :  { %v840_v17 = vsel %vm130_vm5, %v207_v2, %v806_v7 }
 0x42d   :  { %v822_v9 = vpop.permute.xlu2 %821 }
 0x435   :  { %v810_v16 = vpop.permute.xlu2 %809 }
 0x436   :  { %v842_v18 = vsel %vm841_vm11, %v840_v17, %v810_v16 }
 0x447   :  { %v834_v28 = vpop.permute.xlu2 %833 }
 0x44c   :  { %v818_v8 = vpop.permute.xlu0 %817 }
 0x44d   :  { %v845_v11 = vsel %vm130_vm5, %v423_v10, %v818_v8 }
 0x44e   :  { %v846_v14 = vsel %vm841_vm11, %v845_v11, %v822_v9 }
 0x45d   :  { %v830_v22 = vpop.permute.xlu0 %829 }
 0x470   :  { %v826_v12 = vpop.permute.xlu1 %825 }
 0x471   :  { %v847_v15 = vsel %vm843_vm10, %v846_v14, %v826_v12 }
 0x472   :  { %852 = vst [vmem:[%s1267_s6 + $0x8] sm:$0xff] %v847_v15 }
 0x478   :  { %v814_v20 = vpop.permute.xlu1 %813 }
 0x479   :  { %v844_v21 = vsel %vm843_vm10, %v842_v18, %v814_v20 }
 0x47a   :  { %851 = vst [vmem:[%s1267_s6] sm:$0xff] %v844_v21 }
 0x480   :  { %v838_v42 = vpop.permute.xlu1 %837 }
 0x481   :  { %v639_v23 = vpop.f32.mrf.mxu2 }
 0x482   :  { %v848_v24 = vsel %vm130_vm5, %v639_v23, %v830_v22 }
 0x483   :  { %v849_v26 = vsel %vm841_vm11, %v848_v24, %v834_v28 }
 0x484   :  { %v850_v30 = vsel %vm843_vm10, %v849_v26, %v838_v42 }
 0x485   :  { %853 = vst [vmem:[%s1267_s6 + $0x10] sm:$0xff] %v850_v30 }
 0x486   :  { %858 = vsyncpa [#allocation4], 1 }
 0x487   :  { %859 = vsyncpa [#allocation6], 1 }

</bundles_post_ra>
